<compile_context>
chip_gen: v6e
topology: v6e:2x2x1
jax: 0.10.0
libtpu: 0.0.40
codegen_flags: <defaults>
</compile_context>

<pallas_src>
import jax
import jax.numpy as jnp
from jax import lax
from jax.experimental import pallas as pl
from jax.experimental.pallas import tpu as pltpu

EPS = 1e-5


def _aug_kernel(gamma_ref, beta_ref, x_ref, o_ref):
    # x_ref: (TB, H*W) block; each row is one flattened image.
    x = x_ref[...].astype(jnp.float32)
    inv_n = jnp.float32(1.0 / x.shape[-1])

    # Per-image (per-row) statistics — keepdims so nothing leaks across rows.
    mean = jnp.sum(x, axis=-1, keepdims=True) * inv_n
    xc = x - mean                                    # reused for var and output
    var = jnp.sum(xc * xc, axis=-1, keepdims=True) * inv_n

    # Fold gamma into the scale so the per-element path is one mul + one add.
    scale = lax.rsqrt(var + EPS) * gamma_ref[0]
    o_ref[...] = (xc * scale + beta_ref[0]).astype(o_ref.dtype)


def _pick_block_rows(n_rows, row_elems, dtype):
    """Pick TB: a multiple of 8 dividing n_rows (or n_rows itself), sized so the
    input block stays ~4 MiB (double-buffered in+out ~16 MiB, safe on v5e/v6e/v7x)
    while keeping >= 2 grid steps when possible for megacore sharding."""
    itemsize = jnp.dtype(dtype).itemsize
    target_rows = max(8, (4 * 1024 * 1024) // max(1, row_elems * itemsize))
    if n_rows >= 16:
        target_rows = min(target_rows, n_rows // 2)
    best = None
    tb = 8
    limit = min(target_rows, n_rows)
    while tb <= limit:
        if n_rows % tb == 0:
            best = tb
        tb += 8
    if best is None:
        # Full leading dim is always a legal block (equals the array dim).
        best = n_rows
    return best


def batch_augmenter(x, gamma, beta):
    """Pallas equivalent of BatchAugmenter(aug)(x), aug = standardize + affine.

    x:     (B, C, H, W)
    gamma: (1,) float32 parameter
    beta:  (1,) float32 parameter
    """
    B, C, H, W = x.shape
    N = B * C
    HW = H * W

    # Lane-dense 2-D view: last dim H*W maps to the 128-wide lane axis.
    x2 = x.reshape(N, HW)  # glue: matches x.view(B*C, H, W), flattened per image

    TB = _pick_block_rows(N, HW, x.dtype)
    grid = (N // TB,)

    out2 = pl.pallas_call(
        _aug_kernel,
        out_shape=jax.ShapeDtypeStruct((N, HW), x.dtype),
        grid=grid,
        in_specs=[
            pl.BlockSpec(memory_space=pltpu.MemorySpace.SMEM),  # gamma (scalar)
            pl.BlockSpec(memory_space=pltpu.MemorySpace.SMEM),  # beta  (scalar)
            pl.BlockSpec((TB, HW), lambda i: (i, 0)),           # x block
        ],
        out_specs=pl.BlockSpec((TB, HW), lambda i: (i, 0)),
        compiler_params=pltpu.CompilerParams(
            dimension_semantics=("parallel",),
            vmem_limit_bytes=32 << 20,
        ),
    )(gamma, beta, x2)

    return out2.reshape(B, C, H, W)  # glue: matches .view(B, C, H, W)


def _reference(x, gamma, beta):
    B, C, H, W = x.shape
    xf = x.reshape(B * C, H, W).astype(jnp.float32)
    mean = xf.mean(axis=(1, 2), keepdims=True)
    var = ((xf - mean) ** 2).mean(axis=(1, 2), keepdims=True)
    out = (xf - mean) * lax.rsqrt(var + EPS) * gamma[0] + beta[0]
    return out.reshape(B, C, H, W).astype(x.dtype)


if __name__ == "__main__":
    key = jax.random.PRNGKey(0)
    B, C, H, W = 2, 4, 16, 16
    x = jax.random.normal(key, (B, C, H, W), dtype=jnp.float32)

    # Deterministic augmentation parameters (synthetic, not loaded).
    gamma = jnp.array([1.25], dtype=jnp.float32)
    beta = jnp.array([0.1], dtype=jnp.float32)

    out = batch_augmenter(x, gamma, beta)
    out = jax.block_until_ready(out)

    ref = _reference(x, gamma, beta)
    assert out.shape == (B, C, H, W)
    assert jnp.allclose(out, ref, atol=1e-5, rtol=1e-5)

    print("KERNEL_OK")
</pallas_src>

<mosaic_0001>
module attributes {stable_mosaic.version = 11 : i64} {
  func.func @_aug_kernel(%arg0: i32, %arg1: memref<1xf32, #tpu.memory_space<smem>>, %arg2: memref<1xf32, #tpu.memory_space<smem>>, %arg3: memref<8x256xf32, #tpu.memory_space<vmem>>, %arg4: memref<8x256xf32, #tpu.memory_space<vmem>>) attributes {dimension_semantics = [#tpu.dimension_semantics<parallel>], iteration_bounds = array<i64: 1>, scalar_prefetch = 0 : i64, scratch_operands = 0 : i64, tpu.core_type = #tpu.core_type<tc>, window_params = [{transform_indices = @transform_0, window_bounds = array<i64: 1>}, {transform_indices = @transform_1, window_bounds = array<i64: 1>}, {transform_indices = @transform_2, window_bounds = array<i64: 8, 256>}, {transform_indices = @transform_3, window_bounds = array<i64: 8, 256>}]} {
    %c0 = arith.constant 0 : index
    %c0_0 = arith.constant 0 : index
    %0 = vector.load %arg3[%c0, %c0_0] : memref<8x256xf32, #tpu.memory_space<vmem>>, vector<8x256xf32>
    %cst = arith.constant dense<0.000000e+00> : vector<8xf32>
    %1 = vector.multi_reduction <add>, %0, %cst [1] : vector<8x256xf32> to vector<8xf32>
    %2 = vector.shape_cast %1 : vector<8xf32> to vector<8x1xf32>
    %cst_1 = arith.constant 3.906250e-03 : f32
    %3 = vector.broadcast %cst_1 : f32 to vector<8x1xf32>
    %4 = arith.mulf %2, %3 : vector<8x1xf32>
    %5 = vector.broadcast %4 : vector<8x1xf32> to vector<8x256xf32>
    %6 = arith.subf %0, %5 : vector<8x256xf32>
    %7 = arith.mulf %6, %6 : vector<8x256xf32>
    %cst_2 = arith.constant dense<0.000000e+00> : vector<8xf32>
    %8 = vector.multi_reduction <add>, %7, %cst_2 [1] : vector<8x256xf32> to vector<8xf32>
    %9 = vector.shape_cast %8 : vector<8xf32> to vector<8x1xf32>
    %cst_3 = arith.constant 3.906250e-03 : f32
    %10 = vector.broadcast %cst_3 : f32 to vector<8x1xf32>
    %11 = arith.mulf %9, %10 : vector<8x1xf32>
    %cst_4 = arith.constant 9.99999974E-6 : f32
    %12 = vector.broadcast %cst_4 : f32 to vector<8x1xf32>
    %13 = arith.addf %11, %12 : vector<8x1xf32>
    %14 = math.rsqrt %13 : vector<8x1xf32>
    %c0_5 = arith.constant 0 : index
    %15 = memref.load %arg1[%c0_5] : memref<1xf32, #tpu.memory_space<smem>>
    %16 = vector.broadcast %15 : f32 to vector<8x1xf32>
    %17 = arith.mulf %14, %16 : vector<8x1xf32>
    %18 = vector.broadcast %17 : vector<8x1xf32> to vector<8x256xf32>
    %19 = arith.mulf %6, %18 : vector<8x256xf32>
    %c0_6 = arith.constant 0 : index
    %20 = memref.load %arg2[%c0_6] : memref<1xf32, #tpu.memory_space<smem>>
    %21 = vector.broadcast %20 : f32 to vector<8x256xf32>
    %22 = arith.addf %19, %21 : vector<8x256xf32>
    %c0_7 = arith.constant 0 : index
    %c0_8 = arith.constant 0 : index
    %23 = vector.load %arg4[%c0_7, %c0_8] : memref<8x256xf32, #tpu.memory_space<vmem>>, vector<8x256xf32>
    tpu.vector_store %arg4[%c0_7, %c0_8], %22 {strides = array<i32>} : memref<8x256xf32, #tpu.memory_space<vmem>>, vector<8x256xf32>,
    return
  }
  func.func @transform_0(%arg0: i32) -> i32 {
    %c0_i32 = arith.constant 0 : i32
    %c0_i32_0 = arith.constant 0 : i32
    return %c0_i32 : i32
  }
  func.func @transform_1(%arg0: i32) -> i32 {
    %c0_i32 = arith.constant 0 : i32
    %c0_i32_0 = arith.constant 0 : i32
    return %c0_i32 : i32
  }
  func.func @transform_2(%arg0: i32) -> (i32, i32) {
    %c0_i32 = arith.constant 0 : i32
    %c0_i32_0 = arith.constant 0 : i32
    return %arg0, %c0_i32 : i32, i32
  }
  func.func @transform_3(%arg0: i32) -> (i32, i32) {
    %c0_i32 = arith.constant 0 : i32
    %c0_i32_0 = arith.constant 0 : i32
    return %arg0, %c0_i32 : i32, i32
  }
}

</mosaic_0001>

<bundles_post_ra>
// kernel: tpu_custom_call.1
= control target key start
LH: loop header
LB: loop body
LE: loop exit
PB: predicated region body
PF: predicated region fallthrough
CT: control target
= control target key end

     0   :  { %10 = vsyncpa [#allocation5], 0  ;;  %s153_s0 = inlined_call_operand.<no memory space> [shape: f32[1], index: 0, kind: input, shape index: {}]   ;;  %s154_s1 = inlined_call_operand.<no memory space> [shape: f32[1], index: 1, kind: input, shape index: {}]   ;;  %s155_s2 = inlined_call_operand.hbm [shape: f32[8,256], index: 2, kind: input, shape index: {}]   ;;  %s156_s3 = inlined_call_operand.hbm [shape: f32[8,256], index: 3, kind: output, shape index: {}]  }
   0x1   :  { %11 = vsyncpa [#allocation6], 0  ;;  %s119_s12 = smov [#allocation4]  }
   0x2   :  { %s22_s13 = sshll.u32 %s119_s12, 4  ;;  %s23_s13 = int_to_ptr.vmem [resolvable:$true] %s22_s13 }
   0x3   :  { %s83_s14 = scalar_lea.vmem %s23_s13, 256  ;;  %p88_p1 = scmp.lt.s32.totalorder %s23_s13, %s23_s13 }
   0x4   :  { %p84_p0 = scmp.ne.s32.totalorder %s23_s13, %s83_s14  ;;  %p89_p2 = scmp.lt.s32.totalorder %s83_s14, %s83_s14 }
   0x6   :  { %p90_p3 = por %p89_p2, %p88_p1 }
   0x8   :  { %p91_p4 = pnand %p90_p3, %p84_p0 }
   0xa   :  { %94 = shalt.err (!%p91_p4)
}
   0xb   :  { %25 = dma.hbm_to_vmem [thread:$0]  %s155_s2, 256, %s23_s13, [#allocation5]  }
   0xc   :  { %115 = dma.done.wait [#allocation5], 256  }
   0xd   :  { %116 = vsyncadd [#allocation5], 4294967040  ;;  %v29_v0 = vld [vmem:[#allocation4] sm:$0xff]  ;;  %v30_v1 = vld [vmem:[#allocation4 + $0x8] sm:$0xff]  ;;  %v46_v13 = vstv %s153_s0  ;;  %v51_v16 = vstv %s154_s1  ;;  %s120_s20 = smov [#allocation7]  }
   0xe   :  { %v31_v2 = vadd.f32 %v30_v1, %v29_v0  ;;  %s62_s21 = sshll.u32 %s120_s20, 4  ;;  %s63_s21 = int_to_ptr.vmem [resolvable:$true] %s62_s21 }
   0xf   :  { %s95_s22 = scalar_lea.vmem %s63_s21, 256  ;;  %p100_p6 = scmp.lt.s32.totalorder %s63_s21, %s63_s21 }
  0x10   :  { %32 = vadd.xlane.f32.xlu0 %v31_v2  ;;  %p96_p5 = scmp.ne.s32.totalorder %s63_s21, %s95_s22  ;;  %p101_p7 = scmp.lt.s32.totalorder %s95_s22, %s95_s22 }
  0x12   :  { %p102_p8 = por %p101_p7, %p100_p6 }
  0x14   :  { %p103_p9 = pnand %p102_p8, %p96_p5 }
  0x99   :  { %v33_v3 = vpop.xlane.xlu0 %32 }
  0x9a   :  { %v34_v4 = vmul.f32 0.00390625, %v33_v3 }
  0x9c   :  { %v35_v5 = vsub.f32 %v29_v0, %v34_v4  ;;  %v36_v6 = vsub.f32 %v30_v1, %v34_v4 }
  0x9e   :  { %v37_v7 = vmul.f32 %v35_v5, %v35_v5  ;;  %v38_v8 = vmul.f32 %v36_v6, %v36_v6 }
  0xa0   :  { %v39_v9 = vadd.f32 %v38_v8, %v37_v7 }
  0xa2   :  { %40 = vadd.xlane.f32.xlu0 %v39_v9 }
 0x12b   :  { %v41_v10 = vpop.xlane.xlu0 %40 }
 0x12c   :  { %v42_v11 = vmul.f32 0.00390625, %v41_v10 }
 0x12e   :  { %v43_v12 = vadd.f32 1e-05, %v42_v11 }
 0x130   :  { %73 = vrsqrt.f32 %v43_v12 }
 0x13d   :  { %v74_v14 = vpop.eup %73 }
 0x13e   :  { %v47_v15 = vmul.f32 %v74_v14, %v46_v13 }
 0x140   :  { %v48_v17 = vmul.f32 %v47_v15, %v35_v5  ;;  %v49_v18 = vmul.f32 %v47_v15, %v36_v6 }
 0x142   :  { %v52_v19 = vadd.f32 %v51_v16, %v48_v17  ;;  %v53_v20 = vadd.f32 %v51_v16, %v49_v18 }
 0x144   :  { %54 = vst [vmem:[#allocation7] sm:$0xff] %v52_v19  ;;  %55 = vst [vmem:[#allocation7 + $0x8] sm:$0xff] %v53_v20 }
 0x145   :  { %106 = shalt.err (!%p103_p9)
}
 0x146   :  { %65 = dma.vmem_to_hbm [thread:$0]  %s63_s21, 256, %s156_s3, [#allocation6]  }
 0x147   :  { %117 = dma.done.wait [#allocation6], 256  }
 0x148   :  { %118 = vsyncadd [#allocation6], 4294967040 }
 0x149   :  { %69 = vsyncpa [#allocation5], 1 }
 0x14a   :  { %70 = vsyncpa [#allocation6], 1 }

</bundles_post_ra>
